<compile_context>
chip_gen: v6e
topology: v6e:2x2x1
jax: 0.10.0
libtpu: 0.0.40
codegen_flags: <defaults>
</compile_context>

<pallas_src>
import functools

import jax
import jax.numpy as jnp
from jax import lax
from jax.experimental import pallas as pl
from jax.experimental.pallas import tpu as pltpu


_TARGET_BLOCK_BYTES = 2 << 20   # ~2 MiB of input bytes per grid step
_MAX_DB_FOOTPRINT = 12 << 20    # double-buffered cap: fits default scoped VMEM everywhere


def _round_up(a, b):
    return ((a + b - 1) // b) * b


def _pow_static(x, gamma):
    """x ** gamma with a trace-time-static exponent; small integer gammas use VALU muls."""
    g = float(gamma)
    if g == 0.0:
        return jnp.ones_like(x)
    if g == 1.0:
        return x
    if g.is_integer() and 2.0 <= g <= 8.0:
        y = x
        for _ in range(int(g) - 1):
            y = y * x
        return y
    return x ** g  # non-integer gamma: fall back to pow (EUP log+exp)


def _focal_loss_kernel(x_ref, t_ref, o_ref, *, alpha, gamma, reduction,
                       n_valid, needs_mask):
    # x_ref: (C, TILE_R, 128) logits (input dtype)  -- classes on the leading axis,
    #        batch packed densely onto (sublane, lane).
    # t_ref: (TILE_R, 128) int32 targets.
    i = pl.program_id(0)
    c, tr, _ = x_ref.shape

    x = x_ref[...].astype(jnp.float32)                    # (C, TR, 128)
    t = t_ref[...]                                         # (TR, 128)

    # Numerically stable log-sum-exp over the tiny static class axis (axis 0 ->
    # plain VALU ops across C slabs, no cross-lane work).
    m = jnp.max(x, axis=0, keepdims=True)                  # (1, TR, 128)
    z = x - m                                              # (C, TR, 128)
    ez = jnp.exp(z)                                        # (C, TR, 128)
    denom = jnp.sum(ez, axis=0)                            # (TR, 128)
    log_denom = jnp.log(denom)                             # (TR, 128)

    # Cross-entropy from the target-class (shifted) logit only.
    cls = lax.broadcasted_iota(jnp.int32, (c, tr, 128), 0)
    z_t = jnp.sum(jnp.where(cls == t[None, :, :], z, 0.0), axis=0)   # (TR, 128)
    ce = log_denom - z_t                                   # (TR, 128)

    # Focal weight uses only class column 1 of the softmax (as in the PyTorch code).
    p1 = ez[1] * pl.reciprocal(denom, approx=True)         # (TR, 128)
    w_pos = _pow_static(1.0 - p1, gamma)
    if alpha != 1.0:
        w_pos = alpha * w_pos
    if (1.0 - alpha) != 0.0:
        w_neg = (1.0 - alpha) * _pow_static(p1, gamma)
    else:
        w_neg = jnp.zeros_like(p1)                         # alpha == 1: folded at trace time
    w1 = jnp.where(t == 1, w_pos, w_neg)                   # (TR, 128)

    fl = ce * w1                                           # (TR, 128) per-sample focal loss

    if reduction == "none":
        # Padded tail lanes are sliced off by the wrapper; no mask needed.
        o_ref[...] = fl
        return

    def _tile_partial(v):
        # (TR, 128) -> (8, 128) partial sum (VALU tree-add of TR/8 vregs).
        return jnp.sum(v.reshape(tr // 8, 8, 128), axis=0)

    o_ref[...] = _tile_partial(fl)

    if needs_mask:
        # Only the last tile can contain padded samples; recompute its partial
        # with the tail mask applied (iota/compare only runs on that one tile).
        @pl.when(i == pl.num_programs(0) - 1)
        def _():
            row = lax.broadcasted_iota(jnp.int32, (tr, 128), 0)
            lane = lax.broadcasted_iota(jnp.int32, (tr, 128), 1)
            idx = (i * tr + row) * 128 + lane
            o_ref[...] = _tile_partial(jnp.where(idx < n_valid, fl, 0.0))


def focal_loss(inputs, targets, alpha=1.0, gamma=2.0, reduction="mean",
               tile_r=None):
    """inputs: (N, C) float logits (f32 or bf16); targets: (N,) int class indices."""
    n, c = inputs.shape
    if c < 2:
        raise ValueError("FocalLoss indexes focal_weights[:, 1]; need C >= 2")
    if reduction not in ("mean", "sum", "none"):
        raise ValueError(f"unsupported reduction: {reduction}")

    x_bytes = jnp.dtype(inputs.dtype).itemsize
    # Bytes moved per 128-lane row of the batch (logits + targets).
    row_bytes = 128 * (c * x_bytes + 4)

    if tile_r is None:
        tile_r = max(8, (_TARGET_BLOCK_BYTES // row_bytes) // 8 * 8)
        # Keep the double-buffered footprint (inputs + worst-case 'none' output)
        # under the default scoped-VMEM limit of every TPU generation.
        while tile_r > 8 and 2 * (row_bytes + 128 * 4) * tile_r > _MAX_DB_FOOTPRINT:
            tile_r = max(8, (tile_r // 2) // 8 * 8)
    else:
        tile_r = max(8, (int(tile_r) // 8) * 8)

    r_needed = pl.cdiv(n, 128)
    tile_r = min(tile_r, _round_up(r_needed, 8))

    n_pad = _round_up(n, tile_r * 128)
    r = n_pad // 128
    num_tiles = r // tile_r
    needs_mask = (n_pad != n)

    # One relayout pass: (N, C) -> class-major (C, R, 128); pad + reshape fuse
    # into the transpose copy.  No dtype cast here (done in-kernel).
    x_t = jnp.transpose(inputs)                                   # (C, N)
    x_t = jnp.pad(x_t, ((0, 0), (0, n_pad - n))).reshape(c, r, 128)
    t_p = jnp.pad(targets.astype(jnp.int32), (0, n_pad - n)).reshape(r, 128)

    if reduction == "none":
        out_shape = jax.ShapeDtypeStruct((r, 128), jnp.float32)
        out_spec = pl.BlockSpec((tile_r, 128), lambda i: (i, 0))
    else:
        # Per-tile lane-dense partial sums: independent output blocks, so the
        # grid stays fully "parallel" (megacore on v7x) and avoids serial
        # single-scalar accumulation drift.
        out_shape = jax.ShapeDtypeStruct((num_tiles * 8, 128), jnp.float32)
        out_spec = pl.BlockSpec((8, 128), lambda i: (i, 0))

    kernel = functools.partial(
        _focal_loss_kernel,
        alpha=float(alpha), gamma=float(gamma), reduction=reduction,
        n_valid=n, needs_mask=needs_mask,
    )

    out = pl.pallas_call(
        kernel,
        out_shape=out_shape,
        grid_spec=pltpu.PrefetchScalarGridSpec(
            num_scalar_prefetch=0,
            grid=(num_tiles,),
            in_specs=[
                pl.BlockSpec((c, tile_r, 128), lambda i: (0, i, 0)),
                pl.BlockSpec((tile_r, 128), lambda i: (i, 0)),
            ],
            out_specs=out_spec,
        ),
        compiler_params=pltpu.CompilerParams(
            dimension_semantics=("parallel",)),
    )(x_t, t_p)

    if reduction == "none":
        return out.reshape(-1)[:n]
    total = jnp.sum(out)
    if reduction == "mean":
        return total / n
    return total


def _focal_loss_ref(inputs, targets, alpha=1.0, gamma=2.0, reduction="mean"):
    # Pure-JAX reference mirroring the PyTorch forward.
    x = inputs.astype(jnp.float32)
    log_sm = jax.nn.log_softmax(x, axis=1)
    p = jax.nn.softmax(x, axis=1)
    one_hot = jax.nn.one_hot(targets, x.shape[1], dtype=jnp.float32)
    ce = -jnp.sum(one_hot * log_sm, axis=1)
    fw = jnp.where(one_hot == 1.0,
                   alpha * (1.0 - p) ** gamma,
                   (1.0 - alpha) * p ** gamma)
    fl = ce * fw[:, 1]
    if reduction == "mean":
        return jnp.mean(fl)
    if reduction == "sum":
        return jnp.sum(fl)
    return fl


if __name__ == "__main__":
    key = jax.random.PRNGKey(0)
    k_x, k_t = jax.random.split(key)

    # Small shapes consistent with the module: batch of 8 samples, 4 classes.
    N, C = 8, 4
    inputs = jax.random.normal(k_x, (N, C), dtype=jnp.float32)
    targets = jax.random.randint(k_t, (N,), 0, C, dtype=jnp.int32)

    out = focal_loss(inputs, targets, alpha=1.0, gamma=2.0, reduction="mean")
    out = jax.block_until_ready(out)
    ref = _focal_loss_ref(inputs, targets, 1.0, 2.0, "mean")
    assert jnp.allclose(out, ref, atol=5e-3, rtol=5e-3), (out, ref)

    # Multi-tile + ragged/padded-tail path: N=2500 with tile_r=8 -> 3 grid steps.
    k_x2, k_t2 = jax.random.split(jax.random.PRNGKey(1))
    N2 = 2500
    inputs2 = jax.random.normal(k_x2, (N2, C), dtype=jnp.float32)
    targets2 = jax.random.randint(k_t2, (N2,), 0, C, dtype=jnp.int32)
    for red in ("mean", "sum", "none"):
        got = jax.block_until_ready(
            focal_loss(inputs2, targets2, alpha=1.0, gamma=2.0,
                       reduction=red, tile_r=8))
        want = _focal_loss_ref(inputs2, targets2, 1.0, 2.0, red)
        assert jnp.allclose(got, want, atol=5e-3, rtol=5e-3), (red, got, want)

    print("KERNEL_OK")
</pallas_src>

<mosaic_0001>
module attributes {stable_mosaic.version = 11 : i64} {
  func.func @_focal_loss_kernel(%arg0: i32, %arg1: memref<4x8x128xf32, #tpu.memory_space<vmem>>, %arg2: memref<8x128xi32, #tpu.memory_space<vmem>>, %arg3: memref<8x128xf32, #tpu.memory_space<vmem>>) attributes {dimension_semantics = [#tpu.dimension_semantics<parallel>], iteration_bounds = array<i64: 1>, scalar_prefetch = 0 : i64, scratch_operands = 0 : i64, tpu.core_type = #tpu.core_type<tc>, window_params = [{transform_indices = @transform_0, window_bounds = array<i64: 4, 8, 128>}, {transform_indices = @transform_1, window_bounds = array<i64: 8, 128>}, {transform_indices = @transform_2, window_bounds = array<i64: 8, 128>}]} {
    %c0 = arith.constant 0 : index
    %c0_0 = arith.constant 0 : index
    %c0_1 = arith.constant 0 : index
    %0 = vector.load %arg1[%c0, %c0_0, %c0_1] : memref<4x8x128xf32, #tpu.memory_space<vmem>>, vector<4x8x128xf32>
    %c0_2 = arith.constant 0 : index
    %c0_3 = arith.constant 0 : index
    %1 = vector.load %arg2[%c0_2, %c0_3] : memref<8x128xi32, #tpu.memory_space<vmem>>, vector<8x128xi32>
    %cst = arith.constant dense<0xFF800000> : vector<8x128xf32>
    %2 = vector.multi_reduction <maximumf>, %0, %cst [0] : vector<4x8x128xf32> to vector<8x128xf32>
    %3 = vector.shape_cast %2 : vector<8x128xf32> to vector<1x8x128xf32>
    %4 = vector.broadcast %3 : vector<1x8x128xf32> to vector<4x8x128xf32>
    %5 = arith.subf %0, %4 : vector<4x8x128xf32>
    %6 = math.exp %5 : vector<4x8x128xf32>
    %cst_4 = arith.constant dense<0.000000e+00> : vector<8x128xf32>
    %7 = vector.multi_reduction <add>, %6, %cst_4 [0] : vector<4x8x128xf32> to vector<8x128xf32>
    %8 = math.log %7 : vector<8x128xf32>
    %9 = tpu.iota {dimensions = array<i32: 0>} : vector<4x8x128xi32>
    %10 = vector.shape_cast %1 : vector<8x128xi32> to vector<1x8x128xi32>
    %11 = vector.broadcast %10 : vector<1x8x128xi32> to vector<4x8x128xi32>
    %12 = arith.cmpi eq, %9, %11 : vector<4x8x128xi32>
    %cst_5 = arith.constant 0.000000e+00 : f32
    %13 = vector.broadcast %cst_5 : f32 to vector<4x8x128xf32>
    %14 = arith.select %12, %5, %13 : vector<4x8x128xi1>, vector<4x8x128xf32>
    %cst_6 = arith.constant dense<0.000000e+00> : vector<8x128xf32>
    %15 = vector.multi_reduction <add>, %14, %cst_6 [0] : vector<4x8x128xf32> to vector<8x128xf32>
    %16 = arith.subf %8, %15 : vector<8x128xf32>
    %17 = vector.extract_strided_slice %6 {offsets = [1, 0, 0], sizes = [1, 8, 128], strides = [1, 1, 1]} : vector<4x8x128xf32> to vector<1x8x128xf32>
    %18 = vector.shape_cast %17 : vector<1x8x128xf32> to vector<8x128xf32>
    %19 = tpu.reciprocal %7 {approx = true} : vector<8x128xf32> -> vector<8x128xf32>
    %20 = arith.mulf %18, %19 : vector<8x128xf32>
    %cst_7 = arith.constant 1.000000e+00 : f32
    %21 = vector.broadcast %cst_7 : f32 to vector<8x128xf32>
    %22 = arith.subf %21, %20 : vector<8x128xf32>
    %23 = arith.mulf %22, %22 : vector<8x128xf32>
    %cst_8 = arith.constant 0.000000e+00 : f32
    %24 = vector.broadcast %cst_8 : f32 to vector<8x128xf32>
    %c1_i32 = arith.constant 1 : i32
    %25 = vector.broadcast %c1_i32 : i32 to vector<8x128xi32>
    %26 = arith.cmpi eq, %1, %25 : vector<8x128xi32>
    %27 = arith.select %26, %23, %24 : vector<8x128xi1>, vector<8x128xf32>
    %28 = arith.mulf %16, %27 : vector<8x128xf32>
    %29 = vector.shape_cast %28 : vector<8x128xf32> to vector<1x8x128xf32>
    %cst_9 = arith.constant dense<0.000000e+00> : vector<8x128xf32>
    %30 = vector.multi_reduction <add>, %29, %cst_9 [0] : vector<1x8x128xf32> to vector<8x128xf32>
    %c0_10 = arith.constant 0 : index
    %c0_11 = arith.constant 0 : index
    %31 = vector.load %arg3[%c0_10, %c0_11] : memref<8x128xf32, #tpu.memory_space<vmem>>, vector<8x128xf32>
    tpu.vector_store %arg3[%c0_10, %c0_11], %30 {strides = array<i32>} : memref<8x128xf32, #tpu.memory_space<vmem>>, vector<8x128xf32>,
    %c0_i32 = arith.constant 0 : i32
    %32 = arith.cmpi eq, %arg0, %c0_i32 : i32
    %33 = arith.extui %32 : i1 to i32
    %c0_i32_12 = arith.constant 0 : i32
    %34 = arith.cmpi ne, %33, %c0_i32_12 : i32
    scf.if %34 {
      %35 = tpu.iota {dimensions = array<i32: 0>} : vector<8x128xi32>
      %36 = tpu.iota {dimensions = array<i32: 1>} : vector<8x128xi32>
      %c8_i32 = arith.constant 8 : i32
      %37 = arith.muli %arg0, %c8_i32 : i32
      %38 = vector.broadcast %37 : i32 to vector<8x128xi32>
      %39 = arith.addi %38, %35 : vector<8x128xi32>
      %c128_i32 = arith.constant 128 : i32
      %40 = vector.broadcast %c128_i32 : i32 to vector<8x128xi32>
      %41 = arith.muli %39, %40 : vector<8x128xi32>
      %42 = arith.addi %41, %36 : vector<8x128xi32>
      %c8_i32_13 = arith.constant 8 : i32
      %43 = vector.broadcast %c8_i32_13 : i32 to vector<8x128xi32>
      %44 = arith.cmpi slt, %42, %43 : vector<8x128xi32>
      %cst_14 = arith.constant 0.000000e+00 : f32
      %45 = vector.broadcast %cst_14 : f32 to vector<8x128xf32>
      %46 = arith.select %44, %28, %45 : vector<8x128xi1>, vector<8x128xf32>
      %47 = vector.shape_cast %46 : vector<8x128xf32> to vector<1x8x128xf32>
      %cst_15 = arith.constant dense<0.000000e+00> : vector<8x128xf32>
      %48 = vector.multi_reduction <add>, %47, %cst_15 [0] : vector<1x8x128xf32> to vector<8x128xf32>
      %c0_16 = arith.constant 0 : index
      %c0_17 = arith.constant 0 : index
      %49 = vector.load %arg3[%c0_16, %c0_17] : memref<8x128xf32, #tpu.memory_space<vmem>>, vector<8x128xf32>
      tpu.vector_store %arg3[%c0_16, %c0_17], %48 {strides = array<i32>} : memref<8x128xf32, #tpu.memory_space<vmem>>, vector<8x128xf32>,
    } else {
    }
    return
  }
  func.func @transform_0(%arg0: i32) -> (i32, i32, i32) {
    %c0_i32 = arith.constant 0 : i32
    %c0_i32_0 = arith.constant 0 : i32
    %c0_i32_1 = arith.constant 0 : i32
    return %c0_i32, %arg0, %c0_i32_0 : i32, i32, i32
  }
  func.func @transform_1(%arg0: i32) -> (i32, i32) {
    %c0_i32 = arith.constant 0 : i32
    %c0_i32_0 = arith.constant 0 : i32
    return %arg0, %c0_i32 : i32, i32
  }
  func.func @transform_2(%arg0: i32) -> (i32, i32) {
    %c0_i32 = arith.constant 0 : i32
    %c0_i32_0 = arith.constant 0 : i32
    return %arg0, %c0_i32 : i32, i32
  }
}

</mosaic_0001>

<bundles_post_ra>
// kernel: tpu_custom_call.1
= control target key start
LH: loop header
LB: loop body
LE: loop exit
PB: predicated region body
PF: predicated region fallthrough
CT: control target
= control target key end

     0   :  { %7 = vsyncpa [#allocation3], 0  ;;  %s230_s0 = inlined_call_operand.hbm [shape: f32[4,8,128], index: 0, kind: input, shape index: {}]   ;;  %s231_s1 = inlined_call_operand.hbm [shape: s32[8,128], index: 1, kind: input, shape index: {}]   ;;  %s232_s2 = inlined_call_operand.hbm [shape: f32[8,128], index: 2, kind: output, shape index: {}]  }
   0x1   :  { %8 = vsyncpa [#allocation6], 0 }
   0x2   :  { %9 = vsyncpa [#allocation4], 0  ;;  %s199_s9 = smov [#allocation2]  }
   0x3   :  { %s15_s10 = sshll.u32 %s199_s9, 4  ;;  %s16_s10 = int_to_ptr.vmem [resolvable:$true] %s15_s10 }
   0x4   :  { %s141_s11 = scalar_lea.vmem %s16_s10, 512  ;;  %p146_p1 = scmp.lt.s32.totalorder %s16_s10, %s16_s10 }
   0x5   :  { %p142_p0 = scmp.ne.s32.totalorder %s16_s10, %s141_s11  ;;  %p147_p2 = scmp.lt.s32.totalorder %s141_s11, %s141_s11 }
   0x7   :  { %p148_p3 = por %p147_p2, %p146_p1 }
   0x9   :  { %p149_p4 = pnand %p148_p3, %p142_p0 }
   0xb   :  { %152 = shalt.err (!%p149_p4)
}
   0xc   :  { %s200_s12 = smov 128   ;;  %s201_s13 = smov 8  }
   0xd   :  { %21 = dma.hbm_to_vmem [thread:$0]  %s230_s0, 512, %s16_s10, [#allocation3], %s200_s12, %s200_s12, %s201_s13  }
   0xe   :  { %s202_s16 = smov [#allocation5]  }
   0xf   :  { %s28_s17 = sshll.u32 %s202_s16, 4  ;;  %s29_s17 = int_to_ptr.vmem [resolvable:$true] %s28_s17 }
  0x10   :  { %s161_s18 = scalar_lea.vmem %s29_s17, 128  ;;  %p166_p6 = scmp.lt.s32.totalorder %s29_s17, %s29_s17 }
  0x11   :  { %p162_p5 = scmp.ne.s32.totalorder %s29_s17, %s161_s18  ;;  %p167_p7 = scmp.lt.s32.totalorder %s161_s18, %s161_s18 }
  0x13   :  { %p168_p8 = por %p167_p7, %p166_p6 }
  0x15   :  { %p169_p9 = pnand %p168_p8, %p162_p5 }
  0x17   :  { %172 = shalt.err (!%p169_p9)
}
  0x18   :  { %31 = dma.hbm_to_vmem [thread:$0]  %s231_s1, 128, %s29_s17, [#allocation6]  }
  0x19   :  { %193 = dma.done.wait [#allocation3], 512  }
  0x1a   :  { %194 = vsyncadd [#allocation3], 4294966784 }
  0x1b   :  { %195 = dma.done.wait [#allocation6], 128  }
  0x1c   :  { %196 = vsyncadd [#allocation6], 4294967168  ;;  %v38_v0 = vld [vmem:[#allocation2] sm:$0xff]  ;;  %v39_v1 = vld [vmem:[#allocation2 + $0x8] sm:$0xff]  ;;  %v87_v25 = vlaneseq  ;;  %s203_s0 = smov [#allocation7]  }
  0x1d   :  { %v40_v2 = vld [vmem:[#allocation2 + $0x10] sm:$0xff]  ;;  %v41_v3 = vld [vmem:[#allocation2 + $0x18] sm:$0xff]  ;;  %v43_v4 = vmax.f32 %v38_v0, %v39_v1  ;;  %v42_v21 = vld [vmem:[#allocation5] sm:$0xff]  ;;  %s106_s1 = sshll.u32 %s203_s0, 4  ;;  %s107_s1 = int_to_ptr.vmem [resolvable:$true] %s106_s1 }
  0x1e   :  { %v44_v5 = vmax.f32 %v40_v2, %v41_v3  ;;  %vm63_vm0 = vcmp.eq.s32.totalorder %v42_v21, 0  ;;  %vm64_vm1 = vcmp.eq.s32.totalorder %v42_v21, 1  ;;  %vm65_vm2 = vcmp.eq.s32.totalorder %v42_v21, 2  ;;  %s173_s21 = scalar_lea.vmem %s107_s1, 128  ;;  %p178_p11 = scmp.lt.s32.totalorder %s107_s1, %s107_s1 }
  0x1f   :  { %vm66_vm3 = vcmp.eq.s32.totalorder %v42_v21, 3  ;;  %v88_v28 = vshrl.u32 %v87_v25, 7  ;;  %v90_v32 = vand.u32 127, %v87_v25  ;;  %p174_p10 = scmp.ne.s32.totalorder %s107_s1, %s173_s21  ;;  %p179_p12 = scmp.lt.s32.totalorder %s173_s21, %s173_s21 }
  0x20   :  { %v45_v6 = vmax.f32 %v43_v4, %v44_v5 }
  0x21   :  { %v94_v33 = vmul.u32 128, %v88_v28  ;;  %p180_p13 = por %p179_p12, %p178_p11 }
  0x22   :  { %v46_v7 = vsub.f32 %v38_v0, %v45_v6  ;;  %v47_v8 = vsub.f32 %v39_v1, %v45_v6  ;;  %v48_v9 = vsub.f32 %v40_v2, %v45_v6  ;;  %v49_v10 = vsub.f32 %v41_v3, %v45_v6 }
  0x23   :  { %v95_v39 = vadd.s32 %v94_v33, %v90_v32  ;;  %p181_p0 = pnand %p180_p13, %p174_p10 }
  0x24   :  { %v50_v11 = vmul.f32 1.442695, %v46_v7  ;;  %v52_v12 = vmul.f32 1.442695, %v47_v8  ;;  %v54_v13 = vmul.f32 1.442695, %v48_v9 }
  0x25   :  { %v56_v14 = vmul.f32 1.442695, %v49_v10  ;;  %v67_v23 = vsel %vm63_vm0, %v46_v7, 0.0  ;;  %v68_v24 = vsel %vm64_vm1, %v47_v8, 0.0  ;;  %v69_v27 = vsel %vm65_vm2, %v48_v9, 0.0 }
  0x26   :  { %121 = vpow2.f32 %v50_v11  ;;  %v71_v26 = vadd.f32 %v68_v24, %v67_v23  ;;  %v70_v30 = vsel %vm66_vm3, %v49_v10, 0.0  ;;  %vm96_vm4 = vcmp.lt.s32.totalorder %v95_v39, 8 }
  0x27   :  { %123 = vpow2.f32 %v52_v12 }
  0x28   :  { %125 = vpow2.f32 %v54_v13  ;;  %v72_v29 = vadd.f32 %v71_v26, %v69_v27 }
  0x29   :  { %127 = vpow2.f32 %v56_v14 }
  0x2a   :  { %v73_v36 = vadd.f32 %v72_v29, %v70_v30 }
  0x33   :  { %v122_v15 = vpop.eup %121 }
  0x34   :  { %v124_v16 = vpop.eup %123 }
  0x35   :  { %v126_v17 = vpop.eup %125  ;;  %v58_v18 = vadd.f32 %v124_v16, %v122_v15 }
  0x36   :  { %v128_v19 = vpop.eup %127 }
  0x37   :  { %v59_v20 = vadd.f32 %v126_v17, %v58_v18 }
  0x39   :  { %v60_v22 = vadd.f32 %v128_v19, %v59_v20 }
  0x3b   :  { %129 = vlog2.f32 %v60_v22 }
  0x3c   :  { %131 = vrcp.f32 %v60_v22 }
  0x48   :  { %v130_v31 = vpop.eup %129 }
  0x49   :  { %v132_v34 = vpop.eup %131  ;;  %v62_v35 = vmul.f32 0.6931472, %v130_v31 }
  0x4a   :  { %v76_v37 = vmul.f32 %v132_v34, %v124_v16 }
  0x4b   :  { %v74_v40 = vsub.f32 %v62_v35, %v73_v36 }
  0x4c   :  { %v77_v38 = vsub.f32 1.0, %v76_v37 }
  0x4e   :  { %v78_v41 = vmul.f32 %v77_v38, %v77_v38 }
  0x50   :  { %v79_v42 = vsel %vm64_vm1, %v78_v41, 0.0 }
  0x51   :  { %v80_v43 = vmul.f32 %v79_v42, %v74_v40 }
  0x53   :  { %v97_v44 = vsel %vm96_vm4, %v80_v43, 0.0 }
  0x54   :  { %99 = vst [vmem:[#allocation7] sm:$0xff] %v97_v44 }
  0x55   :  { %184 = shalt.err (!%p181_p0)
}
  0x56   :  { %109 = dma.vmem_to_hbm [thread:$0]  %s107_s1, 128, %s232_s2, [#allocation4]  }
  0x57   :  { %197 = dma.done.wait [#allocation4], 128  }
  0x58   :  { %198 = vsyncadd [#allocation4], 4294967168 }
  0x59   :  { %113 = vsyncpa [#allocation3], 1 }
  0x5a   :  { %114 = vsyncpa [#allocation6], 1 }
  0x5b   :  { %115 = vsyncpa [#allocation4], 1 }

</bundles_post_ra>
